<compile_context>
chip_gen: v6e
topology: v6e:2x2x1
jax: 0.10.0
libtpu: 0.0.40
codegen_flags: <defaults>
</compile_context>

<pallas_src>
import jax
import jax.numpy as jnp
from jax.experimental import pallas as pl
from jax.experimental.pallas import tpu as pltpu


# ----------------------------------------------------------------------------
# Kernel
# ----------------------------------------------------------------------------
def critic_kernel(x_ref,                             # (TB, Din) = [state|action]
                  w1_ref, b1_ref,                    # fused layer-1 (both heads)
                  w2_ref, b2_ref, w3_ref, b3_ref,    # Q1 hidden layers
                  w5_ref, b5_ref, w6_ref, b6_ref,    # Q2 hidden layers
                  wq_ref, bq_ref,                    # output-head rows (2, H), (1, 2)
                  out_ref):                          # (TB, 2) f32
    H = w2_ref.shape[0]
    cdt = w2_ref.dtype
    f32 = jnp.float32

    # Fused first layer of both heads: one (TB, Din) x (Din, 2H) MXU matmul
    # with f32 accumulation.
    z = jnp.dot(x_ref[...], w1_ref[...], preferred_element_type=f32) + b1_ref[...]
    z = jnp.maximum(z, 0.0)

    def hidden(h0, wa_ref, ba_ref, wb_ref, bb_ref):
        h = jnp.maximum(
            jnp.dot(h0.astype(cdt), wa_ref[...], preferred_element_type=f32)
            + ba_ref[...], 0.0)
        h = jnp.maximum(
            jnp.dot(h.astype(cdt), wb_ref[...], preferred_element_type=f32)
            + bb_ref[...], 0.0)
        return h                                              # f32, (TB, H)

    h = hidden(z[:, :H], w2_ref, b2_ref, w3_ref, b3_ref)      # Q1 path
    g = hidden(z[:, H:], w5_ref, b5_ref, w6_ref, b6_ref)      # Q2 path

    # 1-wide output heads as VPU multiply + XLU lane reduction (f32 throughout):
    # keeps the N=2 work off the MXU entirely and avoids a (TB, 2H) concat copy.
    q1 = jnp.sum(h * wq_ref[0:1, :], axis=-1, keepdims=True)
    q2 = jnp.sum(g * wq_ref[1:2, :], axis=-1, keepdims=True)
    out_ref[...] = jnp.concatenate([q1, q2], axis=-1) + bq_ref[...]


# ----------------------------------------------------------------------------
# Parameter construction / packing
# ----------------------------------------------------------------------------
def init_linear(key, in_dim, out_dim):
    """PyTorch nn.Linear default init: U(-1/sqrt(in), 1/sqrt(in)).
    Weight returned as (in, out) so the kernel computes x @ W."""
    kw, kb = jax.random.split(key)
    bound = 1.0 / jnp.sqrt(jnp.float32(in_dim))
    w = jax.random.uniform(kw, (in_dim, out_dim), jnp.float32, -bound, bound)
    b = jax.random.uniform(kb, (1, out_dim), jnp.float32, -bound, bound)
    return w, b


def make_critic_params(key, state_dim, action_dim, hidden_dim=256):
    in_dim = state_dim + action_dim
    keys = jax.random.split(key, 8)
    return {
        "l1": init_linear(keys[0], in_dim, hidden_dim),
        "l2": init_linear(keys[1], hidden_dim, hidden_dim),
        "l3": init_linear(keys[2], hidden_dim, hidden_dim),
        "q1": init_linear(keys[3], hidden_dim, 1),
        "l4": init_linear(keys[4], in_dim, hidden_dim),
        "l5": init_linear(keys[5], hidden_dim, hidden_dim),
        "l6": init_linear(keys[6], hidden_dim, hidden_dim),
        "q2": init_linear(keys[7], hidden_dim, 1),
    }


def pack_critic_params(params, compute_dtype=jnp.bfloat16):
    """One-time packing (outside the hot path):
       * fuse layer 1 of both heads into a single (Din, 2H) weight,
       * store the two (H, 1) output heads as f32 row vectors (2, H) for the
         in-kernel VPU reduction (no block-diagonal MXU weight),
       * cast hidden weights to `compute_dtype`; biases / head rows stay f32."""
    w1, b1 = params["l1"]; w4, b4 = params["l4"]
    w2, b2 = params["l2"]; w3, b3 = params["l3"]
    w5, b5 = params["l5"]; w6, b6 = params["l6"]
    wq1, bq1 = params["q1"]; wq2, bq2 = params["q2"]

    f32 = jnp.float32
    return dict(
        w1=jnp.concatenate([w1, w4], axis=1).astype(compute_dtype),   # (Din, 2H)
        b1=jnp.concatenate([b1, b4], axis=1).astype(f32),             # (1, 2H)
        w2=w2.astype(compute_dtype), b2=b2.astype(f32),
        w3=w3.astype(compute_dtype), b3=b3.astype(f32),
        w5=w5.astype(compute_dtype), b5=b5.astype(f32),
        w6=w6.astype(compute_dtype), b6=b6.astype(f32),
        wq=jnp.concatenate([wq1, wq2], axis=1).T.astype(f32),         # (2, H)
        bq=jnp.concatenate([bq1, bq2], axis=1).astype(f32),           # (1, 2)
    )


# ----------------------------------------------------------------------------
# Forward
# ----------------------------------------------------------------------------
def _round_up(x, m):
    return (x + m - 1) // m * m


_WEIGHT_KEYS = ("w1", "b1", "w2", "b2", "w3", "b3",
                "w5", "b5", "w6", "b6", "wq", "bq")


def critic_forward(state, action, packed, *, batch_tile=1024):
    """Returns (q1, q2), each of shape (B,), matching Critic.forward."""
    B, S = state.shape
    A = action.shape[1]
    Din = S + A
    cdt = packed["w1"].dtype

    # One cheap concat in the wrapper so layer 1 is a single full-K matmul.
    x = jnp.concatenate([state, action], axis=-1).astype(cdt)     # (B, Din)

    # Batch tile: large tiles amortize per-step overhead (~0.35 us/step); once
    # the batch is big enough, keep >= 2 balanced "parallel" steps so both v7x
    # TensorCores are busy.  Always sublane-aligned for the compute dtype.
    sub = 8 if jnp.dtype(cdt).itemsize == 4 else 16
    tile = min(batch_tile, _round_up(B, sub))
    if batch_tile >= B >= 256:
        tile = _round_up(pl.cdiv(B, 2), sub)      # 2 balanced steps (megacore)
    tile = _round_up(max(tile, sub), sub)

    Bp = _round_up(B, tile)
    if Bp != B:                                   # pad ragged batch; sliced below
        x = jnp.pad(x, ((0, Bp - B), (0, 0)))

    grid = (Bp // tile,)

    # Weight/bias blocks are the full arrays with a constant index map, so they
    # stay resident in VMEM across the grid (no per-step re-fetch).
    full = lambda arr: pl.BlockSpec(arr.shape, lambda i: (0, 0))
    in_specs = [pl.BlockSpec((tile, Din), lambda i: (i, 0))]
    in_specs += [full(packed[k]) for k in _WEIGHT_KEYS]
    out_specs = pl.BlockSpec((tile, 2), lambda i: (i, 0))

    out = pl.pallas_call(
        critic_kernel,
        out_shape=jax.ShapeDtypeStruct((Bp, 2), jnp.float32),
        grid=grid,
        in_specs=in_specs,
        out_specs=out_specs,
        compiler_params=pltpu.CompilerParams(
            dimension_semantics=("parallel",),
            vmem_limit_bytes=32 * 1024 * 1024),
    )(x, *(packed[k] for k in _WEIGHT_KEYS))

    out = out[:B]
    # torch.squeeze(q, dim=-1): (B, 1) -> (B,)
    return out[:, 0], out[:, 1]


# ----------------------------------------------------------------------------
# Pure-JAX reference (mirrors the PyTorch forward exactly, in f32)
# ----------------------------------------------------------------------------
def critic_forward_ref(state, action, params):
    x = jnp.concatenate([state, action], axis=-1).astype(jnp.float32)

    def head(h, layers):
        for (w, b) in layers[:-1]:
            h = jnp.maximum(h @ w + b, 0.0)
        w, b = layers[-1]
        return h @ w + b

    q1 = head(x, [params["l1"], params["l2"], params["l3"], params["q1"]])
    q2 = head(x, [params["l4"], params["l5"], params["l6"], params["q2"]])
    return jnp.squeeze(q1, axis=-1), jnp.squeeze(q2, axis=-1)


# ----------------------------------------------------------------------------
if __name__ == "__main__":
    key = jax.random.PRNGKey(0)
    k_state, k_action, k_params = jax.random.split(key, 3)

    # Small shapes consistent with the module.
    B, state_dim, action_dim, hidden_dim = 16, 12, 4, 32

    state = jax.random.normal(k_state, (B, state_dim), jnp.float32)
    action = jax.random.normal(k_action, (B, action_dim), jnp.float32)
    params = make_critic_params(k_params, state_dim, action_dim, hidden_dim)

    r1, r2 = critic_forward_ref(state, action, params)

    # f32 path: exact semantics of the PyTorch module (tight tolerance).
    packed_f32 = pack_critic_params(params, compute_dtype=jnp.float32)
    q1, q2 = critic_forward(state, action, packed_f32)
    jax.block_until_ready((q1, q2))
    assert q1.shape == (B,) and q2.shape == (B,)
    assert jnp.allclose(q1, r1, atol=1e-4, rtol=1e-4)
    assert jnp.allclose(q2, r2, atol=1e-4, rtol=1e-4)

    # bf16 fast path (production default): looser tolerance.
    packed_bf16 = pack_critic_params(params, compute_dtype=jnp.bfloat16)
    q1b, q2b = critic_forward(state, action, packed_bf16)
    jax.block_until_ready((q1b, q2b))
    assert q1b.shape == (B,) and q2b.shape == (B,)
    assert jnp.allclose(q1b, r1, atol=5e-2, rtol=5e-2)
    assert jnp.allclose(q2b, r2, atol=5e-2, rtol=5e-2)

    print("KERNEL_OK")
</pallas_src>

<mosaic_0001>
module attributes {stable_mosaic.version = 11 : i64} {
  func.func @critic_kernel(%arg0: i32, %arg1: memref<16x16xf32, #tpu.memory_space<vmem>>, %arg2: memref<16x64xf32, #tpu.memory_space<vmem>>, %arg3: memref<1x64xf32, #tpu.memory_space<vmem>>, %arg4: memref<32x32xf32, #tpu.memory_space<vmem>>, %arg5: memref<1x32xf32, #tpu.memory_space<vmem>>, %arg6: memref<32x32xf32, #tpu.memory_space<vmem>>, %arg7: memref<1x32xf32, #tpu.memory_space<vmem>>, %arg8: memref<32x32xf32, #tpu.memory_space<vmem>>, %arg9: memref<1x32xf32, #tpu.memory_space<vmem>>, %arg10: memref<32x32xf32, #tpu.memory_space<vmem>>, %arg11: memref<1x32xf32, #tpu.memory_space<vmem>>, %arg12: memref<2x32xf32, #tpu.memory_space<vmem>>, %arg13: memref<1x2xf32, #tpu.memory_space<vmem>>, %arg14: memref<16x2xf32, #tpu.memory_space<vmem>>) attributes {dimension_semantics = [#tpu.dimension_semantics<parallel>], iteration_bounds = array<i64: 1>, scalar_prefetch = 0 : i64, scratch_operands = 0 : i64, tpu.core_type = #tpu.core_type<tc>, window_params = [{transform_indices = @transform_0, window_bounds = array<i64: 16, 16>}, {pipeline_mode = #tpu.pipeline_mode<synchronous>, transform_indices = @transform_1, window_bounds = array<i64: 16, 64>}, {pipeline_mode = #tpu.pipeline_mode<synchronous>, transform_indices = @transform_2, window_bounds = array<i64: 1, 64>}, {pipeline_mode = #tpu.pipeline_mode<synchronous>, transform_indices = @transform_3, window_bounds = array<i64: 32, 32>}, {pipeline_mode = #tpu.pipeline_mode<synchronous>, transform_indices = @transform_4, window_bounds = array<i64: 1, 32>}, {pipeline_mode = #tpu.pipeline_mode<synchronous>, transform_indices = @transform_5, window_bounds = array<i64: 32, 32>}, {pipeline_mode = #tpu.pipeline_mode<synchronous>, transform_indices = @transform_6, window_bounds = array<i64: 1, 32>}, {pipeline_mode = #tpu.pipeline_mode<synchronous>, transform_indices = @transform_7, window_bounds = array<i64: 32, 32>}, {pipeline_mode = #tpu.pipeline_mode<synchronous>, transform_indices = @transform_8, window_bounds = array<i64: 1, 32>}, {pipeline_mode = #tpu.pipeline_mode<synchronous>, transform_indices = @transform_9, window_bounds = array<i64: 32, 32>}, {pipeline_mode = #tpu.pipeline_mode<synchronous>, transform_indices = @transform_10, window_bounds = array<i64: 1, 32>}, {pipeline_mode = #tpu.pipeline_mode<synchronous>, transform_indices = @transform_11, window_bounds = array<i64: 2, 32>}, {pipeline_mode = #tpu.pipeline_mode<synchronous>, transform_indices = @transform_12, window_bounds = array<i64: 1, 2>}, {transform_indices = @transform_13, window_bounds = array<i64: 16, 2>}]} {
    %c0 = arith.constant 0 : index
    %c0_0 = arith.constant 0 : index
    %0 = vector.load %arg1[%c0, %c0_0] : memref<16x16xf32, #tpu.memory_space<vmem>>, vector<16x16xf32>
    %c0_1 = arith.constant 0 : index
    %c0_2 = arith.constant 0 : index
    %1 = vector.load %arg2[%c0_1, %c0_2] : memref<16x64xf32, #tpu.memory_space<vmem>>, vector<16x64xf32>
    %cst = arith.constant dense<0.000000e+00> : vector<16x64xf32>
    %2 = tpu.matmul %0, %1, %cst {dimension_numbers = #tpu.dot_dimension_numbers<[1], [0], [0], [1], [0, 0, 1, 1], [], []>} : vector<16x16xf32>, vector<16x64xf32>, vector<16x64xf32> -> vector<16x64xf32>
    %c0_3 = arith.constant 0 : index
    %c0_4 = arith.constant 0 : index
    %3 = vector.load %arg3[%c0_3, %c0_4] : memref<1x64xf32, #tpu.memory_space<vmem>>, vector<1x64xf32>
    %4 = vector.broadcast %3 : vector<1x64xf32> to vector<16x64xf32>
    %5 = arith.addf %2, %4 : vector<16x64xf32>
    %cst_5 = arith.constant 0.000000e+00 : f32
    %6 = vector.broadcast %cst_5 : f32 to vector<16x64xf32>
    %7 = arith.maximumf %5, %6 : vector<16x64xf32>
    %8 = vector.extract_strided_slice %7 {offsets = [0, 0], sizes = [16, 32], strides = [1, 1]} : vector<16x64xf32> to vector<16x32xf32>
    %c0_6 = arith.constant 0 : index
    %c0_7 = arith.constant 0 : index
    %9 = vector.load %arg4[%c0_6, %c0_7] : memref<32x32xf32, #tpu.memory_space<vmem>>, vector<32x32xf32>
    %cst_8 = arith.constant dense<0.000000e+00> : vector<16x32xf32>
    %10 = tpu.matmul %8, %9, %cst_8 {dimension_numbers = #tpu.dot_dimension_numbers<[1], [0], [0], [1], [0, 0, 1, 1], [], []>} : vector<16x32xf32>, vector<32x32xf32>, vector<16x32xf32> -> vector<16x32xf32>
    %c0_9 = arith.constant 0 : index
    %c0_10 = arith.constant 0 : index
    %11 = vector.load %arg5[%c0_9, %c0_10] : memref<1x32xf32, #tpu.memory_space<vmem>>, vector<1x32xf32>
    %12 = vector.broadcast %11 : vector<1x32xf32> to vector<16x32xf32>
    %13 = arith.addf %10, %12 : vector<16x32xf32>
    %cst_11 = arith.constant 0.000000e+00 : f32
    %14 = vector.broadcast %cst_11 : f32 to vector<16x32xf32>
    %15 = arith.maximumf %13, %14 : vector<16x32xf32>
    %c0_12 = arith.constant 0 : index
    %c0_13 = arith.constant 0 : index
    %16 = vector.load %arg6[%c0_12, %c0_13] : memref<32x32xf32, #tpu.memory_space<vmem>>, vector<32x32xf32>
    %cst_14 = arith.constant dense<0.000000e+00> : vector<16x32xf32>
    %17 = tpu.matmul %15, %16, %cst_14 {dimension_numbers = #tpu.dot_dimension_numbers<[1], [0], [0], [1], [0, 0, 1, 1], [], []>} : vector<16x32xf32>, vector<32x32xf32>, vector<16x32xf32> -> vector<16x32xf32>
    %c0_15 = arith.constant 0 : index
    %c0_16 = arith.constant 0 : index
    %18 = vector.load %arg7[%c0_15, %c0_16] : memref<1x32xf32, #tpu.memory_space<vmem>>, vector<1x32xf32>
    %19 = vector.broadcast %18 : vector<1x32xf32> to vector<16x32xf32>
    %20 = arith.addf %17, %19 : vector<16x32xf32>
    %cst_17 = arith.constant 0.000000e+00 : f32
    %21 = vector.broadcast %cst_17 : f32 to vector<16x32xf32>
    %22 = arith.maximumf %20, %21 : vector<16x32xf32>
    %23 = vector.extract_strided_slice %7 {offsets = [0, 32], sizes = [16, 32], strides = [1, 1]} : vector<16x64xf32> to vector<16x32xf32>
    %c0_18 = arith.constant 0 : index
    %c0_19 = arith.constant 0 : index
    %24 = vector.load %arg8[%c0_18, %c0_19] : memref<32x32xf32, #tpu.memory_space<vmem>>, vector<32x32xf32>
    %cst_20 = arith.constant dense<0.000000e+00> : vector<16x32xf32>
    %25 = tpu.matmul %23, %24, %cst_20 {dimension_numbers = #tpu.dot_dimension_numbers<[1], [0], [0], [1], [0, 0, 1, 1], [], []>} : vector<16x32xf32>, vector<32x32xf32>, vector<16x32xf32> -> vector<16x32xf32>
    %c0_21 = arith.constant 0 : index
    %c0_22 = arith.constant 0 : index
    %26 = vector.load %arg9[%c0_21, %c0_22] : memref<1x32xf32, #tpu.memory_space<vmem>>, vector<1x32xf32>
    %27 = vector.broadcast %26 : vector<1x32xf32> to vector<16x32xf32>
    %28 = arith.addf %25, %27 : vector<16x32xf32>
    %cst_23 = arith.constant 0.000000e+00 : f32
    %29 = vector.broadcast %cst_23 : f32 to vector<16x32xf32>
    %30 = arith.maximumf %28, %29 : vector<16x32xf32>
    %c0_24 = arith.constant 0 : index
    %c0_25 = arith.constant 0 : index
    %31 = vector.load %arg10[%c0_24, %c0_25] : memref<32x32xf32, #tpu.memory_space<vmem>>, vector<32x32xf32>
    %cst_26 = arith.constant dense<0.000000e+00> : vector<16x32xf32>
    %32 = tpu.matmul %30, %31, %cst_26 {dimension_numbers = #tpu.dot_dimension_numbers<[1], [0], [0], [1], [0, 0, 1, 1], [], []>} : vector<16x32xf32>, vector<32x32xf32>, vector<16x32xf32> -> vector<16x32xf32>
    %c0_27 = arith.constant 0 : index
    %c0_28 = arith.constant 0 : index
    %33 = vector.load %arg11[%c0_27, %c0_28] : memref<1x32xf32, #tpu.memory_space<vmem>>, vector<1x32xf32>
    %34 = vector.broadcast %33 : vector<1x32xf32> to vector<16x32xf32>
    %35 = arith.addf %32, %34 : vector<16x32xf32>
    %cst_29 = arith.constant 0.000000e+00 : f32
    %36 = vector.broadcast %cst_29 : f32 to vector<16x32xf32>
    %37 = arith.maximumf %35, %36 : vector<16x32xf32>
    %c0_30 = arith.constant 0 : index
    %c0_31 = arith.constant 0 : index
    %38 = vector.load %arg12[%c0_30, %c0_31] : memref<2x32xf32, #tpu.memory_space<vmem>>, vector<1x32xf32>
    %39 = vector.broadcast %38 : vector<1x32xf32> to vector<16x32xf32>
    %40 = arith.mulf %22, %39 : vector<16x32xf32>
    %cst_32 = arith.constant dense<0.000000e+00> : vector<16xf32>
    %41 = vector.multi_reduction <add>, %40, %cst_32 [1] : vector<16x32xf32> to vector<16xf32>
    %42 = vector.shape_cast %41 : vector<16xf32> to vector<16x1xf32>
    %c1 = arith.constant 1 : index
    %c0_33 = arith.constant 0 : index
    %43 = vector.load %arg12[%c1, %c0_33] : memref<2x32xf32, #tpu.memory_space<vmem>>, vector<1x32xf32>
    %44 = vector.broadcast %43 : vector<1x32xf32> to vector<16x32xf32>
    %45 = arith.mulf %37, %44 : vector<16x32xf32>
    %cst_34 = arith.constant dense<0.000000e+00> : vector<16xf32>
    %46 = vector.multi_reduction <add>, %45, %cst_34 [1] : vector<16x32xf32> to vector<16xf32>
    %47 = vector.shape_cast %46 : vector<16xf32> to vector<16x1xf32>
    %48 = tpu.concatenate %42, %47 in 1 : vector<16x1xf32>, vector<16x1xf32> -> vector<16x2xf32>
    %c0_35 = arith.constant 0 : index
    %c0_36 = arith.constant 0 : index
    %49 = vector.load %arg13[%c0_35, %c0_36] : memref<1x2xf32, #tpu.memory_space<vmem>>, vector<1x2xf32>
    %50 = vector.broadcast %49 : vector<1x2xf32> to vector<16x2xf32>
    %51 = arith.addf %48, %50 : vector<16x2xf32>
    %c0_37 = arith.constant 0 : index
    %c0_38 = arith.constant 0 : index
    %52 = vector.load %arg14[%c0_37, %c0_38] : memref<16x2xf32, #tpu.memory_space<vmem>>, vector<16x2xf32>
    tpu.vector_store %arg14[%c0_37, %c0_38], %51 {strides = array<i32>} : memref<16x2xf32, #tpu.memory_space<vmem>>, vector<16x2xf32>,
    return
  }
  func.func @transform_0(%arg0: i32) -> (i32, i32) {
    %c0_i32 = arith.constant 0 : i32
    %c0_i32_0 = arith.constant 0 : i32
    return %arg0, %c0_i32 : i32, i32
  }
  func.func @transform_1(%arg0: i32) -> (i32, i32) {
    %c0_i32 = arith.constant 0 : i32
    %c0_i32_0 = arith.constant 0 : i32
    %c0_i32_1 = arith.constant 0 : i32
    return %c0_i32, %c0_i32_0 : i32, i32
  }
  func.func @transform_2(%arg0: i32) -> (i32, i32) {
    %c0_i32 = arith.constant 0 : i32
    %c0_i32_0 = arith.constant 0 : i32
    %c0_i32_1 = arith.constant 0 : i32
    return %c0_i32, %c0_i32_0 : i32, i32
  }
  func.func @transform_3(%arg0: i32) -> (i32, i32) {
    %c0_i32 = arith.constant 0 : i32
    %c0_i32_0 = arith.constant 0 : i32
    %c0_i32_1 = arith.constant 0 : i32
    return %c0_i32, %c0_i32_0 : i32, i32
  }
  func.func @transform_4(%arg0: i32) -> (i32, i32) {
    %c0_i32 = arith.constant 0 : i32
    %c0_i32_0 = arith.constant 0 : i32
    %c0_i32_1 = arith.constant 0 : i32
    return %c0_i32, %c0_i32_0 : i32, i32
  }
  func.func @transform_5(%arg0: i32) -> (i32, i32) {
    %c0_i32 = arith.constant 0 : i32
    %c0_i32_0 = arith.constant 0 : i32
    %c0_i32_1 = arith.constant 0 : i32
    return %c0_i32, %c0_i32_0 : i32, i32
  }
  func.func @transform_6(%arg0: i32) -> (i32, i32) {
    %c0_i32 = arith.constant 0 : i32
    %c0_i32_0 = arith.constant 0 : i32
    %c0_i32_1 = arith.constant 0 : i32
    return %c0_i32, %c0_i32_0 : i32, i32
  }
  func.func @transform_7(%arg0: i32) -> (i32, i32) {
    %c0_i32 = arith.constant 0 : i32
    %c0_i32_0 = arith.constant 0 : i32
    %c0_i32_1 = arith.constant 0 : i32
    return %c0_i32, %c0_i32_0 : i32, i32
  }
  func.func @transform_8(%arg0: i32) -> (i32, i32) {
    %c0_i32 = arith.constant 0 : i32
    %c0_i32_0 = arith.constant 0 : i32
    %c0_i32_1 = arith.constant 0 : i32
    return %c0_i32, %c0_i32_0 : i32, i32
  }
  func.func @transform_9(%arg0: i32) -> (i32, i32) {
    %c0_i32 = arith.constant 0 : i32
    %c0_i32_0 = arith.constant 0 : i32
    %c0_i32_1 = arith.constant 0 : i32
    return %c0_i32, %c0_i32_0 : i32, i32
  }
  func.func @transform_10(%arg0: i32) -> (i32, i32) {
    %c0_i32 = arith.constant 0 : i32
    %c0_i32_0 = arith.constant 0 : i32
    %c0_i32_1 = arith.constant 0 : i32
    return %c0_i32, %c0_i32_0 : i32, i32
  }
  func.func @transform_11(%arg0: i32) -> (i32, i32) {
    %c0_i32 = arith.constant 0 : i32
    %c0_i32_0 = arith.constant 0 : i32
    %c0_i32_1 = arith.constant 0 : i32
    return %c0_i32, %c0_i32_0 : i32, i32
  }
  func.func @transform_12(%arg0: i32) -> (i32, i32) {
    %c0_i32 = arith.constant 0 : i32
    %c0_i32_0 = arith.constant 0 : i32
    %c0_i32_1 = arith.constant 0 : i32
    return %c0_i32, %c0_i32_0 : i32, i32
  }
  func.func @transform_13(%arg0: i32) -> (i32, i32) {
    %c0_i32 = arith.constant 0 : i32
    %c0_i32_0 = arith.constant 0 : i32
    return %arg0, %c0_i32 : i32, i32
  }
}

</mosaic_0001>

<bundles_post_ra>
// kernel: tpu_custom_call.1
= control target key start
LH: loop header
LB: loop body
LE: loop exit
PB: predicated region body
PF: predicated region fallthrough
CT: control target
= control target key end

     0   :  { %18 = vsyncpa [#allocation3], 0  ;;  %s1040_s0 = inlined_call_operand.hbm [shape: f32[16,16], index: 0, kind: input, shape index: {}]   ;;  %s1041_s1 = inlined_call_operand.hbm [shape: f32[16,64], index: 1, kind: input, shape index: {}]   ;;  %s1042_s2 = inlined_call_operand.vmem [shape: f32[1,64], index: 2, kind: input, shape index: {}]   ;;  %s1043_s3 = inlined_call_operand.hbm [shape: f32[32,32], index: 3, kind: input, shape index: {}]   ;;  %s1044_s4 = inlined_call_operand.vmem [shape: f32[1,32], index: 4, kind: input, shape index: {}]   ;;  %s1045_s5 = inlined_call_operand.hbm [shape: f32[32,32], index: 5, kind: input, shape index: {}]   ;;  %s1046_s6 = inlined_call_operand.vmem [shape: f32[1,32], index: 6, kind: input, shape index: {}]   ;;  %s1047_s7 = inlined_call_operand.hbm [shape: f32[32,32], index: 7, kind: input, shape index: {}]   ;;  %s1048_s8 = inlined_call_operand.vmem [shape: f32[1,32], index: 8, kind: input, shape index: {}]   ;;  %s1049_s9 = inlined_call_operand.hbm [shape: f32[32,32], index: 9, kind: input, shape index: {}]   ;;  %s1050_s10 = inlined_call_operand.vmem [shape: f32[1,32], index: 10, kind: input, shape index: {}]   ;;  %s1051_s11 = inlined_call_operand.vmem [shape: f32[2,32], index: 11, kind: input, shape index: {}]   ;;  %s1052_s12 = inlined_call_operand.vmem [shape: f32[1,2], index: 12, kind: input, shape index: {}]   ;;  %s1053_s13 = inlined_call_operand.vmem [shape: f32[16,2], index: 13, kind: output, shape index: {}]  }
   0x1   :  { %19 = vsyncpa [#allocation5], 0 }
   0x2   :  { %20 = vsyncpa [#allocation8], 0 }
   0x3   :  { %21 = vsyncpa [#allocation11], 0  ;;  %s883_s25 = smov [#allocation4]   ;;  %s884_s27 = smov [#allocation7]  }
   0x4   :  { %s39_s26 = sshll.u32 %s883_s25, 4  ;;  %s67_s28 = sshll.u32 %s884_s27, 4  ;;  %s40_s26 = int_to_ptr.vmem [resolvable:$true] %s39_s26  ;;  %s68_s28 = int_to_ptr.vmem [resolvable:$true] %s67_s28 }
   0x5   :  { %s763_s29 = scalar_lea.vmem %s40_s26, 256  ;;  %p768_p1 = scmp.lt.s32.totalorder %s40_s26, %s40_s26 }
   0x6   :  { %p764_p0 = scmp.ne.s32.totalorder %s40_s26, %s763_s29  ;;  %p769_p2 = scmp.lt.s32.totalorder %s763_s29, %s763_s29 }
   0x8   :  { %p770_p3 = por %p769_p2, %p768_p1 }
   0xa   :  { %p771_p4 = pnand %p770_p3, %p764_p0 }
   0xc   :  { %774 = shalt.err (!%p771_p4)
}
   0xd   :  { %s885_s30 = smov 128   ;;  %s886_s14 = smov 8  }
   0xe   :  { %45 = dma.hbm_to_vmem [thread:$0]  %s1041_s1, 256, %s40_s26, [#allocation5], %s885_s30, %s885_s30, %s886_s14  }
   0xf   :  { %s783_s17 = scalar_lea.vmem %s68_s28, 512  ;;  %p788_p6 = scmp.lt.s32.totalorder %s68_s28, %s68_s28 }
  0x10   :  { %p784_p5 = scmp.ne.s32.totalorder %s68_s28, %s783_s17  ;;  %p789_p7 = scmp.lt.s32.totalorder %s783_s17, %s783_s17 }
  0x12   :  { %p790_p8 = por %p789_p7, %p788_p6 }
  0x14   :  { %p791_p9 = pnand %p790_p8, %p784_p5 }
  0x16   :  { %794 = shalt.err (!%p791_p9)
}
  0x17   :  { %73 = dma.hbm_to_vmem [thread:$0]  %s1045_s5, 512, %s68_s28, [#allocation8], %s885_s30, %s885_s30, %s886_s14  }
  0x18   :  { %s887_s20 = smov [#allocation2]   ;;  %s888_s22 = smov [#allocation6]  }
  0x19   :  { %s27_s21 = sshll.u32 %s887_s20, 4  ;;  %s53_s23 = sshll.u32 %s888_s22, 4  ;;  %s28_s21 = int_to_ptr.vmem [resolvable:$true] %s27_s21  ;;  %s54_s23 = int_to_ptr.vmem [resolvable:$true] %s53_s23 }
  0x1a   :  { %s803_s1 = scalar_lea.vmem %s28_s21, 256  ;;  %p808_p11 = scmp.lt.s32.totalorder %s28_s21, %s28_s21 }
  0x1b   :  { %p804_p10 = scmp.ne.s32.totalorder %s28_s21, %s803_s1  ;;  %p809_p12 = scmp.lt.s32.totalorder %s803_s1, %s803_s1 }
  0x1d   :  { %p810_p13 = por %p809_p12, %p808_p11 }
  0x1f   :  { %p811_p0 = pnand %p810_p13, %p804_p10 }
  0x21   :  { %814 = shalt.err (!%p811_p0)
}
  0x22   :  { %33 = dma.hbm_to_vmem [thread:$0]  %s1040_s0, 256, %s28_s21, [#allocation3], %s885_s30, %s885_s30, %s886_s14  }
  0x23   :  { %s823_s5 = scalar_lea.vmem %s54_s23, 512  ;;  %p828_p2 = scmp.lt.s32.totalorder %s54_s23, %s54_s23 }
  0x24   :  { %p824_p1 = scmp.ne.s32.totalorder %s54_s23, %s823_s5  ;;  %p829_p3 = scmp.lt.s32.totalorder %s823_s5, %s823_s5 }
  0x26   :  { %p830_p4 = por %p829_p3, %p828_p2 }
  0x28   :  { %p831_p5 = pnand %p830_p4, %p824_p1 }
  0x2a   :  { %834 = shalt.err (!%p831_p5)
}
  0x2b   :  { %59 = dma.hbm_to_vmem [thread:$0]  %s1043_s3, 512, %s54_s23, [#allocation5], %s885_s30, %s885_s30, %s886_s14  }
  0x2c   :  { %s889_s28 = smov [#allocation9]   ;;  %s890_s15 = smov [#allocation10]  }
  0x2d   :  { %s81_s29 = sshll.u32 %s889_s28, 4  ;;  %s95_s16 = sshll.u32 %s890_s15, 4  ;;  %s82_s29 = int_to_ptr.vmem [resolvable:$true] %s81_s29  ;;  %s96_s16 = int_to_ptr.vmem [resolvable:$true] %s95_s16 }
  0x2e   :  { %s843_s0 = scalar_lea.vmem %s82_s29, 512  ;;  %p848_p7 = scmp.lt.s32.totalorder %s82_s29, %s82_s29 }
  0x2f   :  { %p844_p6 = scmp.ne.s32.totalorder %s82_s29, %s843_s0  ;;  %p849_p8 = scmp.lt.s32.totalorder %s843_s0, %s843_s0 }
  0x31   :  { %p850_p9 = por %p849_p8, %p848_p7 }
  0x33   :  { %p851_p10 = pnand %p850_p9, %p844_p6 }
  0x35   :  { %854 = shalt.err (!%p851_p10)
}
  0x36   :  { %87 = dma.hbm_to_vmem [thread:$0]  %s1047_s7, 512, %s82_s29, [#allocation8], %s885_s30, %s885_s30, %s886_s14  }
  0x37   :  { %s863_s3 = scalar_lea.vmem %s96_s16, 512  ;;  %p868_p12 = scmp.lt.s32.totalorder %s96_s16, %s96_s16 }
  0x38   :  { %p864_p11 = scmp.ne.s32.totalorder %s96_s16, %s863_s3  ;;  %p869_p13 = scmp.lt.s32.totalorder %s863_s3, %s863_s3 }
  0x3a   :  { %p870_p0 = por %p869_p13, %p868_p12 }
  0x3c   :  { %p871_p1 = pnand %p870_p0, %p864_p11 }
  0x3e   :  { %874 = shalt.err (!%p871_p1)
}
  0x3f   :  { %101 = dma.hbm_to_vmem [thread:$0]  %s1049_s9, 512, %s96_s16, [#allocation11], %s885_s30, %s885_s30, %s886_s14  }
  0x40   :  { %875 = dma.done.wait [#allocation3], 256  }
  0x41   :  { %876 = vsyncadd [#allocation3], 4294967040 }
  0x42   :  { %877 = dma.done.wait [#allocation5], 768  }
  0x43   :  { %878 = vsyncadd [#allocation5], 4294966528 }
  0x44   :  { %879 = dma.done.wait [#allocation8], 1024  }
  0x45   :  { %880 = vsyncadd [#allocation8], 4294966272 }
  0x46   :  { %881 = dma.done.wait [#allocation11], 512  }
  0x47   :  { %882 = vsyncadd [#allocation11], 4294966784  ;;  %vm137_vm0 = vcmask 130048   ;;  %v129_v0 = vld [vmem:[#allocation4 + $0x8] sm:$0xff]  ;;  %v128_v1 = vld [vmem:[#allocation4] sm:$0xff]  ;;  %vm232_vm1 = vcmask 261120  }
  0x48   :  { %v126_v2 = vld [vmem:[#allocation2] sm:$0xff]  ;;  %695 = vmatprep.subr.mxu0 %v129_v0  ;;  %v127_v3 = vld [vmem:[#allocation2 + $0x8] sm:$0xff]  ;;  %v224_v4 = vld [vmem:[#allocation6 + $0x18] sm:$0xff]  ;;  %s891_s30 = smov 96   ;;  %vm626_vm2 = vcmask 7168   ;;  %vm638_vm3 = vcmask 15360  }
  0x49   :  { %699 = vmatprep.mubr.msk.f32.mxu0 %vm137_vm0, %v126_v2  ;;  %696 = vmatpush3.msra.mxu0 %v129_v0  ;;  %v223_v5 = vld [vmem:[#allocation6 + $0x10] sm:$0xff]  ;;  %v222_v6 = vld [vmem:[#allocation6 + $0x8] sm:$0xff]  ;;  %v221_v7 = vld [vmem:[#allocation6] sm:$0xff] }
  0x4a   :  { %697 = vmatprep.subr.mxu0 %v128_v1  ;;  %702 = vmatprep.subr.mxu1 %v224_v4  ;;  %v413_v8 = vld [vmem:[#allocation9 + $0x18] sm:$0xff]  ;;  %v649_v9 = vld [vmem:[%s1042_s2] ss:$0 sm:$0xff]  ;;  %v412_v16 = vld [vmem:[#allocation9 + $0x10] sm:$0xff] }
  0x4b   :  { %698 = vmatpush3.msra.mxu0 %v128_v1  ;;  %703 = vmatpush3.msra.mxu1 %v224_v4  ;;  %v411_v17 = vld [vmem:[#allocation9 + $0x8] sm:$0xff]  ;;  %v410_v18 = vld [vmem:[#allocation9] sm:$0xff]  ;;  %v319_v19 = vld [vmem:[#allocation7 + $0x18] sm:$0xff] }
  0x4c   :  { %700 = vmatmul.mubr.msk.f32.vlgmr.msra.gmra.mxu0 %vm137_vm0, %v127_v3  ;;  %704 = vmatprep.subr.mxu1 %v223_v5  ;;  %v318_v20 = vld [vmem:[#allocation7 + $0x10] sm:$0xff]  ;;  %v317_v21 = vld [vmem:[#allocation7 + $0x8] sm:$0xff]  ;;  %v316_v22 = vld [vmem:[#allocation7] sm:$0xff] }
  0x4d   :  { %705 = vmatpush3.msra.mxu1 %v223_v5  ;;  %713 = vmatprep.subr.mxu0 %v319_v19  ;;  %v509_v25 = vld [vmem:[#allocation10 + $0x18] sm:$0xff]  ;;  %v652_v26 = vld [vmem:[%s1044_s4] ss:$0 sm:$0xff]  ;;  %v508_v33 = vld [vmem:[#allocation10 + $0x10] sm:$0xff] }
  0x4e   :  { %706 = vmatprep.subr.mxu1 %v222_v6  ;;  %714 = vmatpush3.msra.mxu0 %v319_v19  ;;  %v507_v34 = vld [vmem:[#allocation10 + $0x8] sm:$0xff]  ;;  %v506_v35 = vld [vmem:[#allocation10] sm:$0xff] }
  0x4f   :  { %707 = vmatpush3.msra.mxu1 %v222_v6  ;;  %715 = vmatprep.subr.mxu0 %v318_v20  ;;  %v658_v36 = vld [vmem:[%s1048_s8] ss:$0 sm:$0xff]  ;;  %v665_v59 = vld [vmem:[%s1051_s11 + $0x1] ss:$0 sm:$0xff] }
  0x50   :  { %708 = vmatprep.subr.mxu1 %v221_v7  ;;  %716 = vmatpush3.msra.mxu0 %v318_v20  ;;  %v655_v43 = vld [vmem:[%s1046_s6] ss:$0 sm:$0xff] }
  0x51   :  { %709 = vmatpush3.msra.mxu1 %v221_v7  ;;  %717 = vmatprep.subr.mxu0 %v317_v21  ;;  %v664_v47 = vld [vmem:[%s1051_s11] ss:$0 sm:$0xff] }
  0x52   :  { %724 = vmatprep.subr.mxu1 %v413_v8  ;;  %718 = vmatpush3.msra.mxu0 %v317_v21  ;;  %v661_v55 = vld [vmem:[%s1050_s10] ss:$0 sm:$0xff] }
  0x53   :  { %719 = vmatprep.subr.mxu0 %v316_v22  ;;  %v666_v5 = vld [vmem:[%s1052_s12] ss:$0 sm:$0xff] }
  0x54   :  { %720 = vmatpush3.msra.mxu0 %v316_v22 }
  0x55   :  { %735 = vmatprep.subr.mxu0 %v509_v25 }
 0x10c   :  { %v701_v10 = vpop.f32.mrf.mxu0 }
 0x10d   :  { %v216_v11 = vadd.f32 %v701_v10, %v649_v9 }
 0x10e   :  { %v210_v12 = vpop.f32.mrf.mxu0 }
 0x10f   :  { %v211_v13 = vadd.f32 %v649_v9, %v210_v12  ;;  %v220_v15 = vmax.f32 %v216_v11, 0.0 }
 0x111   :  { %v219_v14 = vmax.f32 %v211_v13, 0.0 }
 0x113   :  { %421 = vrot.lane.b32.xlu0 %v219_v14, %s891_s30  ;;  %710 = vmatprep.mubr.msk.f32.mxu1 %vm232_vm1, %v219_v14 }
 0x114   :  { %711 = vmatmul.mubr.msk.f32.vlgmr.msra.gmra.mxu1 %vm232_vm1, %v220_v15 }
 0x115   :  { %725 = vmatpush3.msra.mxu1 %v413_v8 }
 0x116   :  { %726 = vmatprep.subr.mxu1 %v412_v16 }
 0x117   :  { %423 = vrot.lane.b32.xlu0 %v220_v15, %s891_s30  ;;  %727 = vmatpush3.msra.mxu1 %v412_v16 }
 0x118   :  { %728 = vmatprep.subr.mxu1 %v411_v17 }
 0x119   :  { %729 = vmatpush3.msra.mxu1 %v411_v17 }
 0x11a   :  { %730 = vmatprep.subr.mxu1 %v410_v18 }
 0x11b   :  { %731 = vmatpush3.msra.mxu1 %v410_v18 }
 0x185   :  { %v422_v23 = vpop.permute.xlu0 %421 }
 0x186   :  { %732 = vmatprep.mubr.msk.f32.mxu1 %vm232_vm1, %v422_v23 }
 0x189   :  { %v424_v24 = vpop.permute.xlu0 %423 }
 0x18a   :  { %733 = vmatmul.mubr.msk.f32.vlgmr.msra.gmra.mxu1 %vm232_vm1, %v424_v24 }
 0x1d4   :  { %v712_v27 = vpop.f32.mrf.mxu1 }
 0x1d5   :  { %v311_v28 = vadd.f32 %v712_v27, %v652_v26 }
 0x1d6   :  { %v305_v29 = vpop.f32.mrf.mxu1 }
 0x1d7   :  { %v306_v30 = vadd.f32 %v652_v26, %v305_v29  ;;  %v315_v32 = vmax.f32 %v311_v28, 0.0 }
 0x1d9   :  { %v314_v31 = vmax.f32 %v306_v30, 0.0 }
 0x1db   :  { %721 = vmatprep.mubr.msk.f32.mxu0 %vm232_vm1, %v314_v31 }
 0x1dc   :  { %722 = vmatmul.mubr.msk.f32.vlgmr.msra.gmra.mxu0 %vm232_vm1, %v315_v32 }
 0x1dd   :  { %736 = vmatpush3.msra.mxu0 %v509_v25 }
 0x1de   :  { %737 = vmatprep.subr.mxu0 %v508_v33 }
 0x1df   :  { %738 = vmatpush3.msra.mxu0 %v508_v33 }
 0x1e0   :  { %739 = vmatprep.subr.mxu0 %v507_v34 }
 0x1e1   :  { %740 = vmatpush3.msra.mxu0 %v507_v34 }
 0x1e2   :  { %741 = vmatprep.subr.mxu0 %v506_v35 }
 0x1e3   :  { %742 = vmatpush3.msra.mxu0 %v506_v35 }
 0x24a   :  { %v734_v37 = vpop.f32.mrf.mxu1 }
 0x24b   :  { %v501_v38 = vadd.f32 %v734_v37, %v658_v36 }
 0x24c   :  { %v495_v39 = vpop.f32.mrf.mxu1 }
 0x24d   :  { %v496_v40 = vadd.f32 %v658_v36, %v495_v39  ;;  %v505_v42 = vmax.f32 %v501_v38, 0.0 }
 0x24f   :  { %v504_v41 = vmax.f32 %v496_v40, 0.0 }
 0x251   :  { %743 = vmatprep.mubr.msk.f32.mxu0 %vm232_vm1, %v504_v41 }
 0x252   :  { %744 = vmatmul.mubr.msk.f32.vlgmr.msra.gmra.mxu0 %vm232_vm1, %v505_v42 }
 0x29c   :  { %v723_v44 = vpop.f32.mrf.mxu0 }
 0x29d   :  { %v405_v45 = vadd.f32 %v723_v44, %v655_v43 }
 0x29e   :  { %v399_v46 = vpop.f32.mrf.mxu0 }
 0x29f   :  { %v409_v48 = vmax.f32 %v405_v45, 0.0  ;;  %v400_v49 = vadd.f32 %v655_v43, %v399_v46 }
 0x2a1   :  { %v408_v50 = vmax.f32 %v400_v49, 0.0  ;;  %v606_v51 = vmul.f32 %v664_v47, %v409_v48 }
 0x2a3   :  { %v610_v52 = vsel %vm232_vm1, %v606_v51, 0.0  ;;  %v605_v53 = vmul.f32 %v664_v47, %v408_v50 }
 0x2a4   :  { %611 = vadd.xlane.f32.xlu1 %v610_v52 }
 0x2a5   :  { %v607_v54 = vsel %vm232_vm1, %v605_v53, 0.0 }
 0x2a8   :  { %608 = vadd.xlane.f32.xlu1 %v607_v54 }
 0x312   :  { %v745_v56 = vpop.f32.mrf.mxu0 }
 0x313   :  { %v595_v57 = vadd.f32 %v745_v56, %v661_v55 }
 0x314   :  { %v589_v58 = vpop.f32.mrf.mxu0 }
 0x315   :  { %v599_v60 = vmax.f32 %v595_v57, 0.0  ;;  %v590_v61 = vadd.f32 %v661_v55, %v589_v58 }
 0x317   :  { %v598_v62 = vmax.f32 %v590_v61, 0.0  ;;  %v619_v63 = vmul.f32 %v665_v59, %v599_v60 }
 0x319   :  { %v623_v0 = vsel %vm232_vm1, %v619_v63, 0.0  ;;  %v618_v1 = vmul.f32 %v665_v59, %v598_v62 }
 0x31a   :  { %624 = vadd.xlane.f32.xlu1 %v623_v0 }
 0x31b   :  { %v620_v2 = vsel %vm232_vm1, %v618_v1, 0.0 }
 0x31c   :  { %621 = vadd.xlane.f32.xlu0 %v620_v2 }
 0x32d   :  { %v612_v3 = vpop.xlane.xlu1 %611 }
 0x331   :  { %v609_v4 = vpop.xlane.xlu1 %608 }
 0x3a3   :  { %v625_v6 = vpop.xlane.xlu1 %624 }
 0x3a4   :  { %v628_v7 = vsel %vm626_vm2, %v612_v3, %v625_v6 }
 0x3a5   :  { %v637_v8 = vadd.f32 %v666_v5, %v628_v7  ;;  %v622_v9 = vpop.xlane.xlu0 %621 }
 0x3a6   :  { %v627_v10 = vsel %vm626_vm2, %v609_v4, %v622_v9 }
 0x3a7   :  { %640 = vst.msk [vmem:[%s1053_s13 + $0x8] sm:$0xff] %vm638_vm3, %v637_v8  ;;  %v636_v11 = vadd.f32 %v666_v5, %v627_v10 }
 0x3a9   :  { %639 = vst.msk [vmem:[%s1053_s13] sm:$0xff] %vm638_vm3, %v636_v11 }
 0x3aa   :  { %645 = vsyncpa [#allocation3], 1 }
 0x3ab   :  { %646 = vsyncpa [#allocation5], 1 }
 0x3ac   :  { %647 = vsyncpa [#allocation8], 1 }
 0x3ad   :  { %648 = vsyncpa [#allocation11], 1 }

</bundles_post_ra>
